<compile_context>
chip_gen: v5e
topology: v5e:2x2
jax: 0.10.0
libtpu: 0.0.40
codegen_flags: <defaults>
</compile_context>

<pallas_src>
import math

import jax
import jax.numpy as jnp
from jax.experimental import pallas as pl
from jax.experimental.pallas import tpu as pltpu

NEG_SLOPE = 0.01        # nn.LeakyReLU default
BN_EPS = 1e-5           # nn.BatchNorm2d default
_VMEM_LIMIT = 32 * 1024 * 1024   # raise v5e's 16 MiB default scoped VMEM; safe on v6e/v7x


def _row_tile(H):
    """Rows per tile: a multiple of 8 that divides H, preferring >= 2 grid steps."""
    if H % 8 != 0:
        # TODO(synk): support H not divisible by 8 (needs a ragged last tile + masked stats).
        raise ValueError("H must be a multiple of 8")
    for tr in (128, 64, 32, 16, 8):
        if H % tr == 0 and H // tr >= 2:
            return tr
    return H


# ----------------------------- Pallas kernels --------------------------------
def _make_conv_stats_kernel(tr, has_residual):
    """conv3x3 (+bias, +optional residual) + per-tile per-channel (sum, sum_sq)."""

    def kernel(*refs):
        if has_residual:
            xm_ref, xh_ref, w_ref, b_ref, sel_ref, res_ref, y_ref, st_ref, xt_ref = refs
        else:
            xm_ref, xh_ref, w_ref, b_ref, sel_ref, y_ref, st_ref, xt_ref = refs

        wc = y_ref.shape[-1]

        # Assemble the (tr + 2)-row halo'd tile of the zero-padded input in VMEM.
        xt_ref[0:tr, :] = xm_ref[0]
        xt_ref[tr:tr + 2, :] = xh_ref[0, 0:2, :]

        # 3x3 conv == 3 row-banded matmuls (bf16 operands on the MXU, f32 accumulation);
        # the conv bias is folded into the accumulator init (no zeros init + extra add).
        acc = jnp.broadcast_to(b_ref[...], (tr, wc))
        for dh in range(3):
            acc = acc + jnp.dot(
                xt_ref[dh:dh + tr, :].astype(jnp.bfloat16),
                w_ref[dh],
                preferred_element_type=jnp.float32,
            )
        if has_residual:
            acc = acc + res_ref[0]
        y_ref[0] = acc

        # Per-tile per-channel partial sums for the two-pass BatchNorm. The channel
        # gather is a matmul with a 0/1 selector so it rides the MXU instead of
        # forcing a lane->sublane relayout of the (tr, W*C) tile; rounding errors of
        # the bf16 operands average out in the sums.
        sel = sel_ref[...]
        s1 = jnp.sum(jnp.dot(acc.astype(jnp.bfloat16), sel,
                             preferred_element_type=jnp.float32),
                     axis=0, keepdims=True)
        s2 = jnp.sum(jnp.dot((acc * acc).astype(jnp.bfloat16), sel,
                             preferred_element_type=jnp.float32),
                     axis=0, keepdims=True)
        st_ref[...] = jnp.concatenate([s1, s2], axis=0).reshape(st_ref.shape)

    return kernel


def _bn_lrelu_kernel(y_ref, mean_ref, inv_ref, o_ref):
    """(x - mean) * rsqrt(var + eps) followed by LeakyReLU(0.01)."""
    z = (y_ref[...] - mean_ref[...]) * inv_ref[...]
    o_ref[...] = jnp.where(z >= 0, z, NEG_SLOPE * z).astype(o_ref.dtype)


# ------------------------------ stage wrappers --------------------------------
def _conv_stats_pass(x_nhwc, w_band, bias_row, residual_rows):
    """Pass 1 of a stage: conv3x3(+bias, +residual) -> (pre-BN activation, stats partials)."""
    N, H, W, Cin = x_nhwc.shape
    Cout = bias_row.shape[-1] // W
    Lp = (W + 2) * Cin
    Wc = W * Cout
    tr = _row_tile(H)
    nt = H // tr
    hb = tr // 8                      # halo block index stride (halo block is 8 rows)

    # Zero-pad ONCE: 1 px left/right/top, 1 px bottom + 7 spare rows so the 8-row halo
    # block of the last tile stays in bounds; flatten (W+2, Cin) onto the lane axis.
    xp = jnp.pad(x_nhwc, ((0, 0), (1, 7), (1, 1), (0, 0))).reshape(N, H + 8, Lp)

    # 0/1 channel selector used by the per-channel partial-sum matmuls.
    sel = jnp.tile(jnp.eye(Cout, dtype=jnp.bfloat16), (W, 1))      # (W*Cout, Cout)

    has_res = residual_rows is not None

    in_specs = [
        pl.BlockSpec((1, tr, Lp), lambda n, t: (n, t, 0)),              # main rows
        pl.BlockSpec((1, 8, Lp), lambda n, t: (n, (t + 1) * hb, 0)),    # 2-row halo (8-row block)
        pl.BlockSpec((3, Lp, Wc), lambda n, t: (0, 0, 0)),              # banded weights (resident)
        pl.BlockSpec((1, Wc), lambda n, t: (0, 0)),                     # bias row
        pl.BlockSpec((Wc, Cout), lambda n, t: (0, 0)),                  # channel selector
    ]
    args = [xp, xp, w_band, bias_row, sel]
    if has_res:
        in_specs.append(pl.BlockSpec((1, tr, Wc), lambda n, t: (n, t, 0)))
        args.append(residual_rows)

    y, stats = pl.pallas_call(
        _make_conv_stats_kernel(tr, has_res),
        out_shape=(
            jax.ShapeDtypeStruct((N, H, Wc), jnp.float32),              # pre-BN activation
            jax.ShapeDtypeStruct((N, nt, 2, Cout), jnp.float32),        # per-tile (sum, sum_sq)
        ),
        grid_spec=pltpu.PrefetchScalarGridSpec(
            num_scalar_prefetch=0,
            grid=(N, nt),
            in_specs=in_specs,
            out_specs=(
                pl.BlockSpec((1, tr, Wc), lambda n, t: (n, t, 0)),
                pl.BlockSpec((1, 1, 2, Cout), lambda n, t: (n, t, 0, 0)),
            ),
            scratch_shapes=[pltpu.VMEM((tr + 2, Lp), jnp.float32)],
        ),
        compiler_params=pltpu.CompilerParams(
            dimension_semantics=("parallel", "parallel"),
            vmem_limit_bytes=_VMEM_LIMIT,
        ),
    )(*args)
    return y, stats


def _bn_lrelu_pass(y_rows, stats, count, W):
    """Pass 2 of a stage: finalize global BN stats, normalize + LeakyReLU per tile."""
    N, H, Wc = y_rows.shape
    Cout = stats.shape[-1]
    tr = _row_tile(H)

    tot = jnp.sum(stats.reshape(-1, 2, Cout), axis=0)                   # (2, Cout), global
    mean = tot[0] / count
    var = tot[1] / count - mean * mean                                  # biased, as in torch BN
    inv = jax.lax.rsqrt(var + BN_EPS)
    mean_row = jnp.tile(mean, W).reshape(1, 1, Wc)
    inv_row = jnp.tile(inv, W).reshape(1, 1, Wc)

    return pl.pallas_call(
        _bn_lrelu_kernel,
        out_shape=jax.ShapeDtypeStruct((N, H, Wc), jnp.float32),
        grid_spec=pltpu.PrefetchScalarGridSpec(
            num_scalar_prefetch=0,
            grid=(N, H // tr),
            in_specs=[
                pl.BlockSpec((1, tr, Wc), lambda n, t: (n, t, 0)),
                pl.BlockSpec((1, 1, Wc), lambda n, t: (0, 0, 0)),
                pl.BlockSpec((1, 1, Wc), lambda n, t: (0, 0, 0)),
            ],
            out_specs=pl.BlockSpec((1, tr, Wc), lambda n, t: (n, t, 0)),
        ),
        compiler_params=pltpu.CompilerParams(
            dimension_semantics=("parallel", "parallel"),
            vmem_limit_bytes=_VMEM_LIMIT,
        ),
    )(y_rows, mean_row, inv_row)


# --------------------------- weight layout glue --------------------------------
def _banded_weights(w_oihw, W):
    """Torch conv weight (Cout, Cin, 3, 3) -> (3, (W+2)*Cin, W*Cout) bf16 row-banded
    matrices so that  y[h] = sum_dh  xpad_row[h + dh] @ band[dh]  (rows flattened (w, c))."""
    Cout, Cin = w_oihw.shape[0], w_oihw.shape[1]
    w_out = jnp.arange(W)
    bands = []
    for dh in range(3):
        m = jnp.zeros((W + 2, Cin, W, Cout), jnp.float32)
        for dw in range(3):
            tap = jnp.transpose(w_oihw[:, :, dh, dw])                   # (Cin, Cout)
            m = m.at[w_out + dw, :, w_out, :].set(
                jnp.broadcast_to(tap, (W, Cin, Cout)))
        bands.append(m.reshape((W + 2) * Cin, W * Cout))
    return jnp.stack(bands, axis=0).astype(jnp.bfloat16)


def _bias_row(b, W):
    return jnp.tile(b.astype(jnp.float32), W).reshape(1, W * b.shape[0])


# --------------------------------- forward -------------------------------------
def bluestack_forward(x_nchw, params):
    """Bluestack.forward (training-mode BN, gamma=1 / beta=0): NCHW in, NCHW out."""
    x = jnp.transpose(x_nchw, (0, 2, 3, 1)).astype(jnp.float32)         # NHWC
    N, H, W, C = x.shape
    count = N * H * W

    w1 = _banded_weights(params["w1"], W); b1 = _bias_row(params["b1"], W)
    w2 = _banded_weights(params["w2"], W); b2 = _bias_row(params["b2"], W)
    w3 = _banded_weights(params["w3"], W); b3 = _bias_row(params["b3"], W)

    # stage 1: conv1 -> BN1 -> LeakyReLU
    y1, s1 = _conv_stats_pass(x, w1, b1, None)
    h1 = _bn_lrelu_pass(y1, s1, count, W).reshape(N, H, W, -1)
    # stage 2: conv2 -> BN2 -> LeakyReLU
    y2, s2 = _conv_stats_pass(h1, w2, b2, None)
    h2 = _bn_lrelu_pass(y2, s2, count, W).reshape(N, H, W, -1)
    # stage 3: x + conv3 (residual reuses the original x slab), then BN -> LeakyReLU
    y3, s3 = _conv_stats_pass(h2, w3, b3, x.reshape(N, H, W * C))
    out = _bn_lrelu_pass(y3, s3, count, W).reshape(N, H, W, C)

    return jnp.transpose(out, (0, 3, 1, 2))                             # back to NCHW


# --------------------------- pure-JAX reference ---------------------------------
def _ref_forward(x_nchw, torch_params):
    (w1, b1), (w2, b2), (w3, b3) = torch_params

    def conv(x, w, b):
        y = jax.lax.conv_general_dilated(
            x, w, window_strides=(1, 1), padding=((1, 1), (1, 1)),
            dimension_numbers=("NCHW", "OIHW", "NCHW"),
            precision=jax.lax.Precision.HIGHEST)
        return y + b[None, :, None, None]

    def bn(x):
        mean = jnp.mean(x, axis=(0, 2, 3), keepdims=True)
        var = jnp.mean((x - mean) ** 2, axis=(0, 2, 3), keepdims=True)
        return (x - mean) * jax.lax.rsqrt(var + BN_EPS)

    def lrelu(x):
        return jnp.where(x >= 0, x, NEG_SLOPE * x)

    h = lrelu(bn(conv(x_nchw, w1, b1)))
    h = lrelu(bn(conv(h, w2, b2)))
    out = x_nchw + conv(h, w3, b3)
    return lrelu(bn(out))


# ----------------------------------- main ----------------------------------------
if __name__ == "__main__":
    key = jax.random.PRNGKey(0)
    N, C, H, W = 2, 4, 16, 16    # residual add requires in_ch == out_ch
    keys = jax.random.split(key, 7)
    x = jax.random.normal(keys[0], (N, C, H, W), jnp.float32)

    def conv_init(kw, kb, cin, cout):
        bound = 1.0 / math.sqrt(cin * 9)
        w = jax.random.uniform(kw, (cout, cin, 3, 3), jnp.float32, -bound, bound)
        b = jax.random.uniform(kb, (cout,), jnp.float32, -bound, bound)
        return w, b

    W1, B1 = conv_init(keys[1], keys[2], C, C)
    W2, B2 = conv_init(keys[3], keys[4], C, C)
    W3, B3 = conv_init(keys[5], keys[6], C, C)
    params = {"w1": W1, "b1": B1, "w2": W2, "b2": B2, "w3": W3, "b3": B3}

    out = jax.jit(bluestack_forward)(x, params)
    out = jax.block_until_ready(out)
    assert out.shape == (N, C, H, W)

    ref = _ref_forward(x, ((W1, B1), (W2, B2), (W3, B3)))
    max_err = float(jnp.max(jnp.abs(out - ref)))
    # bf16 MXU operands (f32 accumulation / BN math) vs. an all-f32 HIGHEST reference:
    # expected max deviation ~1e-2 on BN-normalized outputs; 5e-2 keeps healthy margin.
    assert max_err < 5e-2, f"kernel mismatch vs reference: {max_err}"

    print("KERNEL_OK")
</pallas_src>

<mosaic_0001>
module attributes {stable_mosaic.version = 11 : i64} {
  func.func @kernel(%arg0: i32, %arg1: i32, %arg2: memref<1x8x72xf32, #tpu.memory_space<vmem>>, %arg3: memref<1x8x72xf32, #tpu.memory_space<vmem>>, %arg4: memref<3x72x64xbf16, #tpu.memory_space<vmem>>, %arg5: memref<1x64xf32, #tpu.memory_space<vmem>>, %arg6: memref<64x4xbf16, #tpu.memory_space<vmem>>, %arg7: memref<1x8x64xf32, #tpu.memory_space<vmem>>, %arg8: memref<1x1x2x4xf32, #tpu.memory_space<vmem>>, %arg9: memref<10x72xf32, #tpu.memory_space<vmem>>) attributes {dimension_semantics = [#tpu.dimension_semantics<parallel>, #tpu.dimension_semantics<parallel>], iteration_bounds = array<i64: 2, 2>, scalar_prefetch = 0 : i64, scratch_operands = 1 : i64, tpu.core_type = #tpu.core_type<tc>, window_params = [{transform_indices = @transform_0, window_bounds = array<i64: 1, 8, 72>}, {transform_indices = @transform_1, window_bounds = array<i64: 1, 8, 72>}, {pipeline_mode = #tpu.pipeline_mode<synchronous>, transform_indices = @transform_2, window_bounds = array<i64: 3, 72, 64>}, {pipeline_mode = #tpu.pipeline_mode<synchronous>, transform_indices = @transform_3, window_bounds = array<i64: 1, 64>}, {pipeline_mode = #tpu.pipeline_mode<synchronous>, transform_indices = @transform_4, window_bounds = array<i64: 64, 4>}, {transform_indices = @transform_5, window_bounds = array<i64: 1, 8, 64>}, {transform_indices = @transform_6, window_bounds = array<i64: 1, 1, 2, 4>}]} {
    %c0 = arith.constant 0 : index
    %c0_0 = arith.constant 0 : index
    %c0_1 = arith.constant 0 : index
    %0 = vector.load %arg2[%c0, %c0_0, %c0_1] : memref<1x8x72xf32, #tpu.memory_space<vmem>>, vector<1x8x72xf32>
    %1 = vector.shape_cast %0 : vector<1x8x72xf32> to vector<8x72xf32>
    %c0_2 = arith.constant 0 : index
    %c0_3 = arith.constant 0 : index
    %2 = vector.load %arg9[%c0_2, %c0_3] : memref<10x72xf32, #tpu.memory_space<vmem>>, vector<8x72xf32>
    tpu.vector_store %arg9[%c0_2, %c0_3], %1 {strides = array<i32>} : memref<10x72xf32, #tpu.memory_space<vmem>>, vector<8x72xf32>,
    %c0_4 = arith.constant 0 : index
    %c0_5 = arith.constant 0 : index
    %c0_6 = arith.constant 0 : index
    %3 = vector.load %arg3[%c0_4, %c0_5, %c0_6] : memref<1x8x72xf32, #tpu.memory_space<vmem>>, vector<1x2x72xf32>
    %4 = vector.shape_cast %3 : vector<1x2x72xf32> to vector<2x72xf32>
    %c8 = arith.constant 8 : index
    %c0_7 = arith.constant 0 : index
    %5 = vector.load %arg9[%c8, %c0_7] : memref<10x72xf32, #tpu.memory_space<vmem>>, vector<2x72xf32>
    tpu.vector_store %arg9[%c8, %c0_7], %4 {strides = array<i32>} : memref<10x72xf32, #tpu.memory_space<vmem>>, vector<2x72xf32>,
    %c0_8 = arith.constant 0 : index
    %c0_9 = arith.constant 0 : index
    %6 = vector.load %arg5[%c0_8, %c0_9] : memref<1x64xf32, #tpu.memory_space<vmem>>, vector<1x64xf32>
    %7 = vector.shape_cast %6 : vector<1x64xf32> to vector<1x64xf32>
    %8 = vector.broadcast %7 : vector<1x64xf32> to vector<8x64xf32>
    %c0_10 = arith.constant 0 : index
    %c0_11 = arith.constant 0 : index
    %9 = vector.load %arg9[%c0_10, %c0_11] : memref<10x72xf32, #tpu.memory_space<vmem>>, vector<8x72xf32>
    %10 = arith.truncf %9 : vector<8x72xf32> to vector<8x72xbf16>
    %c0_12 = arith.constant 0 : index
    %c0_13 = arith.constant 0 : index
    %c0_14 = arith.constant 0 : index
    %11 = vector.load %arg4[%c0_12, %c0_13, %c0_14] : memref<3x72x64xbf16, #tpu.memory_space<vmem>>, vector<1x72x64xbf16>
    %12 = vector.shape_cast %11 : vector<1x72x64xbf16> to vector<72x64xbf16>
    %cst = arith.constant dense<0.000000e+00> : vector<8x64xf32>
    %13 = tpu.matmul %10, %12, %cst {dimension_numbers = #tpu.dot_dimension_numbers<[1], [0], [0], [1], [0, 0, 1, 1], [], []>} : vector<8x72xbf16>, vector<72x64xbf16>, vector<8x64xf32> -> vector<8x64xf32>
    %14 = arith.addf %8, %13 : vector<8x64xf32>
    %c1 = arith.constant 1 : index
    %c0_15 = arith.constant 0 : index
    %15 = vector.load %arg9[%c1, %c0_15] : memref<10x72xf32, #tpu.memory_space<vmem>>, vector<8x72xf32>
    %16 = arith.truncf %15 : vector<8x72xf32> to vector<8x72xbf16>
    %c1_16 = arith.constant 1 : index
    %c0_17 = arith.constant 0 : index
    %c0_18 = arith.constant 0 : index
    %17 = vector.load %arg4[%c1_16, %c0_17, %c0_18] : memref<3x72x64xbf16, #tpu.memory_space<vmem>>, vector<1x72x64xbf16>
    %18 = vector.shape_cast %17 : vector<1x72x64xbf16> to vector<72x64xbf16>
    %cst_19 = arith.constant dense<0.000000e+00> : vector<8x64xf32>
    %19 = tpu.matmul %16, %18, %cst_19 {dimension_numbers = #tpu.dot_dimension_numbers<[1], [0], [0], [1], [0, 0, 1, 1], [], []>} : vector<8x72xbf16>, vector<72x64xbf16>, vector<8x64xf32> -> vector<8x64xf32>
    %20 = arith.addf %14, %19 : vector<8x64xf32>
    %c2 = arith.constant 2 : index
    %c0_20 = arith.constant 0 : index
    %21 = vector.load %arg9[%c2, %c0_20] : memref<10x72xf32, #tpu.memory_space<vmem>>, vector<8x72xf32>
    %22 = arith.truncf %21 : vector<8x72xf32> to vector<8x72xbf16>
    %c2_21 = arith.constant 2 : index
    %c0_22 = arith.constant 0 : index
    %c0_23 = arith.constant 0 : index
    %23 = vector.load %arg4[%c2_21, %c0_22, %c0_23] : memref<3x72x64xbf16, #tpu.memory_space<vmem>>, vector<1x72x64xbf16>
    %24 = vector.shape_cast %23 : vector<1x72x64xbf16> to vector<72x64xbf16>
    %cst_24 = arith.constant dense<0.000000e+00> : vector<8x64xf32>
    %25 = tpu.matmul %22, %24, %cst_24 {dimension_numbers = #tpu.dot_dimension_numbers<[1], [0], [0], [1], [0, 0, 1, 1], [], []>} : vector<8x72xbf16>, vector<72x64xbf16>, vector<8x64xf32> -> vector<8x64xf32>
    %26 = arith.addf %20, %25 : vector<8x64xf32>
    %c0_25 = arith.constant 0 : index
    %c0_26 = arith.constant 0 : index
    %c0_27 = arith.constant 0 : index
    %27 = vector.load %arg7[%c0_25, %c0_26, %c0_27] : memref<1x8x64xf32, #tpu.memory_space<vmem>>, vector<1x8x64xf32>
    %28 = vector.shape_cast %27 : vector<1x8x64xf32> to vector<8x64xf32>
    %29 = vector.shape_cast %26 : vector<8x64xf32> to vector<1x8x64xf32>
    tpu.vector_store %arg7[%c0_25, %c0_26, %c0_27], %29 {strides = array<i32>} : memref<1x8x64xf32, #tpu.memory_space<vmem>>, vector<1x8x64xf32>,
    %c0_28 = arith.constant 0 : index
    %c0_29 = arith.constant 0 : index
    %30 = vector.load %arg6[%c0_28, %c0_29] : memref<64x4xbf16, #tpu.memory_space<vmem>>, vector<64x4xbf16>
    %31 = arith.truncf %26 : vector<8x64xf32> to vector<8x64xbf16>
    %cst_30 = arith.constant dense<0.000000e+00> : vector<8x4xf32>
    %32 = tpu.matmul %31, %30, %cst_30 {dimension_numbers = #tpu.dot_dimension_numbers<[1], [0], [0], [1], [0, 0, 1, 1], [], []>} : vector<8x64xbf16>, vector<64x4xbf16>, vector<8x4xf32> -> vector<8x4xf32>
    %cst_31 = arith.constant dense<0.000000e+00> : vector<4xf32>
    %33 = vector.multi_reduction <add>, %32, %cst_31 [0] : vector<8x4xf32> to vector<4xf32>
    %34 = vector.shape_cast %33 : vector<4xf32> to vector<1x4xf32>
    %35 = arith.mulf %26, %26 : vector<8x64xf32>
    %36 = arith.truncf %35 : vector<8x64xf32> to vector<8x64xbf16>
    %cst_32 = arith.constant dense<0.000000e+00> : vector<8x4xf32>
    %37 = tpu.matmul %36, %30, %cst_32 {dimension_numbers = #tpu.dot_dimension_numbers<[1], [0], [0], [1], [0, 0, 1, 1], [], []>} : vector<8x64xbf16>, vector<64x4xbf16>, vector<8x4xf32> -> vector<8x4xf32>
    %cst_33 = arith.constant dense<0.000000e+00> : vector<4xf32>
    %38 = vector.multi_reduction <add>, %37, %cst_33 [0] : vector<8x4xf32> to vector<4xf32>
    %39 = vector.shape_cast %38 : vector<4xf32> to vector<1x4xf32>
    %40 = tpu.concatenate %34, %39 in 0 : vector<1x4xf32>, vector<1x4xf32> -> vector<2x4xf32>
    %41 = vector.shape_cast %40 : vector<2x4xf32> to vector<1x1x2x4xf32>
    %c0_34 = arith.constant 0 : index
    %c0_35 = arith.constant 0 : index
    %c0_36 = arith.constant 0 : index
    %c0_37 = arith.constant 0 : index
    %42 = vector.load %arg8[%c0_34, %c0_35, %c0_36, %c0_37] : memref<1x1x2x4xf32, #tpu.memory_space<vmem>>, vector<1x1x2x4xf32>
    tpu.vector_store %arg8[%c0_34, %c0_35, %c0_36, %c0_37], %41 {strides = array<i32>} : memref<1x1x2x4xf32, #tpu.memory_space<vmem>>, vector<1x1x2x4xf32>,
    return
  }
  func.func @transform_0(%arg0: i32, %arg1: i32) -> (i32, i32, i32) {
    %c0_i32 = arith.constant 0 : i32
    %c0_i32_0 = arith.constant 0 : i32
    return %arg0, %arg1, %c0_i32 : i32, i32, i32
  }
  func.func @transform_1(%arg0: i32, %arg1: i32) -> (i32, i32, i32) {
    %c1_i32 = arith.constant 1 : i32
    %0 = arith.addi %arg1, %c1_i32 : i32
    %c1_i32_0 = arith.constant 1 : i32
    %1 = arith.muli %0, %c1_i32_0 : i32
    %c0_i32 = arith.constant 0 : i32
    %c0_i32_1 = arith.constant 0 : i32
    return %arg0, %1, %c0_i32 : i32, i32, i32
  }
  func.func @transform_2(%arg0: i32, %arg1: i32) -> (i32, i32, i32) {
    %c0_i32 = arith.constant 0 : i32
    %c0_i32_0 = arith.constant 0 : i32
    %c0_i32_1 = arith.constant 0 : i32
    %c0_i32_2 = arith.constant 0 : i32
    return %c0_i32, %c0_i32_0, %c0_i32_1 : i32, i32, i32
  }
  func.func @transform_3(%arg0: i32, %arg1: i32) -> (i32, i32) {
    %c0_i32 = arith.constant 0 : i32
    %c0_i32_0 = arith.constant 0 : i32
    %c0_i32_1 = arith.constant 0 : i32
    return %c0_i32, %c0_i32_0 : i32, i32
  }
  func.func @transform_4(%arg0: i32, %arg1: i32) -> (i32, i32) {
    %c0_i32 = arith.constant 0 : i32
    %c0_i32_0 = arith.constant 0 : i32
    %c0_i32_1 = arith.constant 0 : i32
    return %c0_i32, %c0_i32_0 : i32, i32
  }
  func.func @transform_5(%arg0: i32, %arg1: i32) -> (i32, i32, i32) {
    %c0_i32 = arith.constant 0 : i32
    %c0_i32_0 = arith.constant 0 : i32
    return %arg0, %arg1, %c0_i32 : i32, i32, i32
  }
  func.func @transform_6(%arg0: i32, %arg1: i32) -> (i32, i32, i32, i32) {
    %c0_i32 = arith.constant 0 : i32
    %c0_i32_0 = arith.constant 0 : i32
    %c0_i32_1 = arith.constant 0 : i32
    return %arg0, %arg1, %c0_i32, %c0_i32_0 : i32, i32, i32, i32
  }
}

module attributes {stable_mosaic.version = 11 : i64} {
  func.func @_bn_lrelu_kernel(%arg0: i32, %arg1: i32, %arg2: memref<1x8x64xf32, #tpu.memory_space<vmem>>, %arg3: memref<1x1x64xf32, #tpu.memory_space<vmem>>, %arg4: memref<1x1x64xf32, #tpu.memory_space<vmem>>, %arg5: memref<1x8x64xf32, #tpu.memory_space<vmem>>) attributes {dimension_semantics = [#tpu.dimension_semantics<parallel>, #tpu.dimension_semantics<parallel>], iteration_bounds = array<i64: 2, 2>, scalar_prefetch = 0 : i64, scratch_operands = 0 : i64, tpu.core_type = #tpu.core_type<tc>, window_params = [{transform_indices = @transform_0, window_bounds = array<i64: 1, 8, 64>}, {pipeline_mode = #tpu.pipeline_mode<synchronous>, transform_indices = @transform_1, window_bounds = array<i64: 1, 1, 64>}, {pipeline_mode = #tpu.pipeline_mode<synchronous>, transform_indices = @transform_2, window_bounds = array<i64: 1, 1, 64>}, {transform_indices = @transform_3, window_bounds = array<i64: 1, 8, 64>}]} {
    %c0 = arith.constant 0 : index
    %c0_0 = arith.constant 0 : index
    %c0_1 = arith.constant 0 : index
    %0 = vector.load %arg2[%c0, %c0_0, %c0_1] : memref<1x8x64xf32, #tpu.memory_space<vmem>>, vector<1x8x64xf32>
    %c0_2 = arith.constant 0 : index
    %c0_3 = arith.constant 0 : index
    %c0_4 = arith.constant 0 : index
    %1 = vector.load %arg3[%c0_2, %c0_3, %c0_4] : memref<1x1x64xf32, #tpu.memory_space<vmem>>, vector<1x1x64xf32>
    %2 = vector.broadcast %1 : vector<1x1x64xf32> to vector<1x8x64xf32>
    %3 = arith.subf %0, %2 : vector<1x8x64xf32>
    %c0_5 = arith.constant 0 : index
    %c0_6 = arith.constant 0 : index
    %c0_7 = arith.constant 0 : index
    %4 = vector.load %arg4[%c0_5, %c0_6, %c0_7] : memref<1x1x64xf32, #tpu.memory_space<vmem>>, vector<1x1x64xf32>
    %5 = vector.broadcast %4 : vector<1x1x64xf32> to vector<1x8x64xf32>
    %6 = arith.mulf %3, %5 : vector<1x8x64xf32>
    %cst = arith.constant 0.000000e+00 : f32
    %7 = vector.broadcast %cst : f32 to vector<1x8x64xf32>
    %8 = arith.cmpf oge, %6, %7 : vector<1x8x64xf32>
    %cst_8 = arith.constant 0.00999999977 : f32
    %9 = vector.broadcast %cst_8 : f32 to vector<1x8x64xf32>
    %10 = arith.mulf %9, %6 : vector<1x8x64xf32>
    %11 = arith.select %8, %6, %10 : vector<1x8x64xi1>, vector<1x8x64xf32>
    %c0_9 = arith.constant 0 : index
    %c0_10 = arith.constant 0 : index
    %c0_11 = arith.constant 0 : index
    %12 = vector.load %arg5[%c0_9, %c0_10, %c0_11] : memref<1x8x64xf32, #tpu.memory_space<vmem>>, vector<1x8x64xf32>
    tpu.vector_store %arg5[%c0_9, %c0_10, %c0_11], %11 {strides = array<i32>} : memref<1x8x64xf32, #tpu.memory_space<vmem>>, vector<1x8x64xf32>,
    return
  }
  func.func @transform_0(%arg0: i32, %arg1: i32) -> (i32, i32, i32) {
    %c0_i32 = arith.constant 0 : i32
    %c0_i32_0 = arith.constant 0 : i32
    return %arg0, %arg1, %c0_i32 : i32, i32, i32
  }
  func.func @transform_1(%arg0: i32, %arg1: i32) -> (i32, i32, i32) {
    %c0_i32 = arith.constant 0 : i32
    %c0_i32_0 = arith.constant 0 : i32
    %c0_i32_1 = arith.constant 0 : i32
    %c0_i32_2 = arith.constant 0 : i32
    return %c0_i32, %c0_i32_0, %c0_i32_1 : i32, i32, i32
  }
  func.func @transform_2(%arg0: i32, %arg1: i32) -> (i32, i32, i32) {
    %c0_i32 = arith.constant 0 : i32
    %c0_i32_0 = arith.constant 0 : i32
    %c0_i32_1 = arith.constant 0 : i32
    %c0_i32_2 = arith.constant 0 : i32
    return %c0_i32, %c0_i32_0, %c0_i32_1 : i32, i32, i32
  }
  func.func @transform_3(%arg0: i32, %arg1: i32) -> (i32, i32, i32) {
    %c0_i32 = arith.constant 0 : i32
    %c0_i32_0 = arith.constant 0 : i32
    return %arg0, %arg1, %c0_i32 : i32, i32, i32
  }
}

module attributes {stable_mosaic.version = 11 : i64} {
  func.func @kernel(%arg0: i32, %arg1: i32, %arg2: memref<1x8x72xf32, #tpu.memory_space<vmem>>, %arg3: memref<1x8x72xf32, #tpu.memory_space<vmem>>, %arg4: memref<3x72x64xbf16, #tpu.memory_space<vmem>>, %arg5: memref<1x64xf32, #tpu.memory_space<vmem>>, %arg6: memref<64x4xbf16, #tpu.memory_space<vmem>>, %arg7: memref<1x8x64xf32, #tpu.memory_space<vmem>>, %arg8: memref<1x8x64xf32, #tpu.memory_space<vmem>>, %arg9: memref<1x1x2x4xf32, #tpu.memory_space<vmem>>, %arg10: memref<10x72xf32, #tpu.memory_space<vmem>>) attributes {dimension_semantics = [#tpu.dimension_semantics<parallel>, #tpu.dimension_semantics<parallel>], iteration_bounds = array<i64: 2, 2>, scalar_prefetch = 0 : i64, scratch_operands = 1 : i64, tpu.core_type = #tpu.core_type<tc>, window_params = [{transform_indices = @transform_0, window_bounds = array<i64: 1, 8, 72>}, {transform_indices = @transform_1, window_bounds = array<i64: 1, 8, 72>}, {pipeline_mode = #tpu.pipeline_mode<synchronous>, transform_indices = @transform_2, window_bounds = array<i64: 3, 72, 64>}, {pipeline_mode = #tpu.pipeline_mode<synchronous>, transform_indices = @transform_3, window_bounds = array<i64: 1, 64>}, {pipeline_mode = #tpu.pipeline_mode<synchronous>, transform_indices = @transform_4, window_bounds = array<i64: 64, 4>}, {transform_indices = @transform_5, window_bounds = array<i64: 1, 8, 64>}, {transform_indices = @transform_6, window_bounds = array<i64: 1, 8, 64>}, {transform_indices = @transform_7, window_bounds = array<i64: 1, 1, 2, 4>}]} {
    %c0 = arith.constant 0 : index
    %c0_0 = arith.constant 0 : index
    %c0_1 = arith.constant 0 : index
    %0 = vector.load %arg2[%c0, %c0_0, %c0_1] : memref<1x8x72xf32, #tpu.memory_space<vmem>>, vector<1x8x72xf32>
    %1 = vector.shape_cast %0 : vector<1x8x72xf32> to vector<8x72xf32>
    %c0_2 = arith.constant 0 : index
    %c0_3 = arith.constant 0 : index
    %2 = vector.load %arg10[%c0_2, %c0_3] : memref<10x72xf32, #tpu.memory_space<vmem>>, vector<8x72xf32>
    tpu.vector_store %arg10[%c0_2, %c0_3], %1 {strides = array<i32>} : memref<10x72xf32, #tpu.memory_space<vmem>>, vector<8x72xf32>,
    %c0_4 = arith.constant 0 : index
    %c0_5 = arith.constant 0 : index
    %c0_6 = arith.constant 0 : index
    %3 = vector.load %arg3[%c0_4, %c0_5, %c0_6] : memref<1x8x72xf32, #tpu.memory_space<vmem>>, vector<1x2x72xf32>
    %4 = vector.shape_cast %3 : vector<1x2x72xf32> to vector<2x72xf32>
    %c8 = arith.constant 8 : index
    %c0_7 = arith.constant 0 : index
    %5 = vector.load %arg10[%c8, %c0_7] : memref<10x72xf32, #tpu.memory_space<vmem>>, vector<2x72xf32>
    tpu.vector_store %arg10[%c8, %c0_7], %4 {strides = array<i32>} : memref<10x72xf32, #tpu.memory_space<vmem>>, vector<2x72xf32>,
    %c0_8 = arith.constant 0 : index
    %c0_9 = arith.constant 0 : index
    %6 = vector.load %arg5[%c0_8, %c0_9] : memref<1x64xf32, #tpu.memory_space<vmem>>, vector<1x64xf32>
    %7 = vector.shape_cast %6 : vector<1x64xf32> to vector<1x64xf32>
    %8 = vector.broadcast %7 : vector<1x64xf32> to vector<8x64xf32>
    %c0_10 = arith.constant 0 : index
    %c0_11 = arith.constant 0 : index
    %9 = vector.load %arg10[%c0_10, %c0_11] : memref<10x72xf32, #tpu.memory_space<vmem>>, vector<8x72xf32>
    %10 = arith.truncf %9 : vector<8x72xf32> to vector<8x72xbf16>
    %c0_12 = arith.constant 0 : index
    %c0_13 = arith.constant 0 : index
    %c0_14 = arith.constant 0 : index
    %11 = vector.load %arg4[%c0_12, %c0_13, %c0_14] : memref<3x72x64xbf16, #tpu.memory_space<vmem>>, vector<1x72x64xbf16>
    %12 = vector.shape_cast %11 : vector<1x72x64xbf16> to vector<72x64xbf16>
    %cst = arith.constant dense<0.000000e+00> : vector<8x64xf32>
    %13 = tpu.matmul %10, %12, %cst {dimension_numbers = #tpu.dot_dimension_numbers<[1], [0], [0], [1], [0, 0, 1, 1], [], []>} : vector<8x72xbf16>, vector<72x64xbf16>, vector<8x64xf32> -> vector<8x64xf32>
    %14 = arith.addf %8, %13 : vector<8x64xf32>
    %c1 = arith.constant 1 : index
    %c0_15 = arith.constant 0 : index
    %15 = vector.load %arg10[%c1, %c0_15] : memref<10x72xf32, #tpu.memory_space<vmem>>, vector<8x72xf32>
    %16 = arith.truncf %15 : vector<8x72xf32> to vector<8x72xbf16>
    %c1_16 = arith.constant 1 : index
    %c0_17 = arith.constant 0 : index
    %c0_18 = arith.constant 0 : index
    %17 = vector.load %arg4[%c1_16, %c0_17, %c0_18] : memref<3x72x64xbf16, #tpu.memory_space<vmem>>, vector<1x72x64xbf16>
    %18 = vector.shape_cast %17 : vector<1x72x64xbf16> to vector<72x64xbf16>
    %cst_19 = arith.constant dense<0.000000e+00> : vector<8x64xf32>
    %19 = tpu.matmul %16, %18, %cst_19 {dimension_numbers = #tpu.dot_dimension_numbers<[1], [0], [0], [1], [0, 0, 1, 1], [], []>} : vector<8x72xbf16>, vector<72x64xbf16>, vector<8x64xf32> -> vector<8x64xf32>
    %20 = arith.addf %14, %19 : vector<8x64xf32>
    %c2 = arith.constant 2 : index
    %c0_20 = arith.constant 0 : index
    %21 = vector.load %arg10[%c2, %c0_20] : memref<10x72xf32, #tpu.memory_space<vmem>>, vector<8x72xf32>
    %22 = arith.truncf %21 : vector<8x72xf32> to vector<8x72xbf16>
    %c2_21 = arith.constant 2 : index
    %c0_22 = arith.constant 0 : index
    %c0_23 = arith.constant 0 : index
    %23 = vector.load %arg4[%c2_21, %c0_22, %c0_23] : memref<3x72x64xbf16, #tpu.memory_space<vmem>>, vector<1x72x64xbf16>
    %24 = vector.shape_cast %23 : vector<1x72x64xbf16> to vector<72x64xbf16>
    %cst_24 = arith.constant dense<0.000000e+00> : vector<8x64xf32>
    %25 = tpu.matmul %22, %24, %cst_24 {dimension_numbers = #tpu.dot_dimension_numbers<[1], [0], [0], [1], [0, 0, 1, 1], [], []>} : vector<8x72xbf16>, vector<72x64xbf16>, vector<8x64xf32> -> vector<8x64xf32>
    %26 = arith.addf %20, %25 : vector<8x64xf32>
    %c0_25 = arith.constant 0 : index
    %c0_26 = arith.constant 0 : index
    %c0_27 = arith.constant 0 : index
    %27 = vector.load %arg7[%c0_25, %c0_26, %c0_27] : memref<1x8x64xf32, #tpu.memory_space<vmem>>, vector<1x8x64xf32>
    %28 = vector.shape_cast %27 : vector<1x8x64xf32> to vector<8x64xf32>
    %29 = arith.addf %26, %28 : vector<8x64xf32>
    %c0_28 = arith.constant 0 : index
    %c0_29 = arith.constant 0 : index
    %c0_30 = arith.constant 0 : index
    %30 = vector.load %arg8[%c0_28, %c0_29, %c0_30] : memref<1x8x64xf32, #tpu.memory_space<vmem>>, vector<1x8x64xf32>
    %31 = vector.shape_cast %30 : vector<1x8x64xf32> to vector<8x64xf32>
    %32 = vector.shape_cast %29 : vector<8x64xf32> to vector<1x8x64xf32>
    tpu.vector_store %arg8[%c0_28, %c0_29, %c0_30], %32 {strides = array<i32>} : memref<1x8x64xf32, #tpu.memory_space<vmem>>, vector<1x8x64xf32>,
    %c0_31 = arith.constant 0 : index
    %c0_32 = arith.constant 0 : index
    %33 = vector.load %arg6[%c0_31, %c0_32] : memref<64x4xbf16, #tpu.memory_space<vmem>>, vector<64x4xbf16>
    %34 = arith.truncf %29 : vector<8x64xf32> to vector<8x64xbf16>
    %cst_33 = arith.constant dense<0.000000e+00> : vector<8x4xf32>
    %35 = tpu.matmul %34, %33, %cst_33 {dimension_numbers = #tpu.dot_dimension_numbers<[1], [0], [0], [1], [0, 0, 1, 1], [], []>} : vector<8x64xbf16>, vector<64x4xbf16>, vector<8x4xf32> -> vector<8x4xf32>
    %cst_34 = arith.constant dense<0.000000e+00> : vector<4xf32>
    %36 = vector.multi_reduction <add>, %35, %cst_34 [0] : vector<8x4xf32> to vector<4xf32>
    %37 = vector.shape_cast %36 : vector<4xf32> to vector<1x4xf32>
    %38 = arith.mulf %29, %29 : vector<8x64xf32>
    %39 = arith.truncf %38 : vector<8x64xf32> to vector<8x64xbf16>
    %cst_35 = arith.constant dense<0.000000e+00> : vector<8x4xf32>
    %40 = tpu.matmul %39, %33, %cst_35 {dimension_numbers = #tpu.dot_dimension_numbers<[1], [0], [0], [1], [0, 0, 1, 1], [], []>} : vector<8x64xbf16>, vector<64x4xbf16>, vector<8x4xf32> -> vector<8x4xf32>
    %cst_36 = arith.constant dense<0.000000e+00> : vector<4xf32>
    %41 = vector.multi_reduction <add>, %40, %cst_36 [0] : vector<8x4xf32> to vector<4xf32>
    %42 = vector.shape_cast %41 : vector<4xf32> to vector<1x4xf32>
    %43 = tpu.concatenate %37, %42 in 0 : vector<1x4xf32>, vector<1x4xf32> -> vector<2x4xf32>
    %44 = vector.shape_cast %43 : vector<2x4xf32> to vector<1x1x2x4xf32>
    %c0_37 = arith.constant 0 : index
    %c0_38 = arith.constant 0 : index
    %c0_39 = arith.constant 0 : index
    %c0_40 = arith.constant 0 : index
    %45 = vector.load %arg9[%c0_37, %c0_38, %c0_39, %c0_40] : memref<1x1x2x4xf32, #tpu.memory_space<vmem>>, vector<1x1x2x4xf32>
    tpu.vector_store %arg9[%c0_37, %c0_38, %c0_39, %c0_40], %44 {strides = array<i32>} : memref<1x1x2x4xf32, #tpu.memory_space<vmem>>, vector<1x1x2x4xf32>,
    return
  }
  func.func @transform_0(%arg0: i32, %arg1: i32) -> (i32, i32, i32) {
    %c0_i32 = arith.constant 0 : i32
    %c0_i32_0 = arith.constant 0 : i32
    return %arg0, %arg1, %c0_i32 : i32, i32, i32
  }
  func.func @transform_1(%arg0: i32, %arg1: i32) -> (i32, i32, i32) {
    %c1_i32 = arith.constant 1 : i32
    %0 = arith.addi %arg1, %c1_i32 : i32
    %c1_i32_0 = arith.constant 1 : i32
    %1 = arith.muli %0, %c1_i32_0 : i32
    %c0_i32 = arith.constant 0 : i32
    %c0_i32_1 = arith.constant 0 : i32
    return %arg0, %1, %c0_i32 : i32, i32, i32
  }
  func.func @transform_2(%arg0: i32, %arg1: i32) -> (i32, i32, i32) {
    %c0_i32 = arith.constant 0 : i32
    %c0_i32_0 = arith.constant 0 : i32
    %c0_i32_1 = arith.constant 0 : i32
    %c0_i32_2 = arith.constant 0 : i32
    return %c0_i32, %c0_i32_0, %c0_i32_1 : i32, i32, i32
  }
  func.func @transform_3(%arg0: i32, %arg1: i32) -> (i32, i32) {
    %c0_i32 = arith.constant 0 : i32
    %c0_i32_0 = arith.constant 0 : i32
    %c0_i32_1 = arith.constant 0 : i32
    return %c0_i32, %c0_i32_0 : i32, i32
  }
  func.func @transform_4(%arg0: i32, %arg1: i32) -> (i32, i32) {
    %c0_i32 = arith.constant 0 : i32
    %c0_i32_0 = arith.constant 0 : i32
    %c0_i32_1 = arith.constant 0 : i32
    return %c0_i32, %c0_i32_0 : i32, i32
  }
  func.func @transform_5(%arg0: i32, %arg1: i32) -> (i32, i32, i32) {
    %c0_i32 = arith.constant 0 : i32
    %c0_i32_0 = arith.constant 0 : i32
    return %arg0, %arg1, %c0_i32 : i32, i32, i32
  }
  func.func @transform_6(%arg0: i32, %arg1: i32) -> (i32, i32, i32) {
    %c0_i32 = arith.constant 0 : i32
    %c0_i32_0 = arith.constant 0 : i32
    return %arg0, %arg1, %c0_i32 : i32, i32, i32
  }
  func.func @transform_7(%arg0: i32, %arg1: i32) -> (i32, i32, i32, i32) {
    %c0_i32 = arith.constant 0 : i32
    %c0_i32_0 = arith.constant 0 : i32
    %c0_i32_1 = arith.constant 0 : i32
    return %arg0, %arg1, %c0_i32, %c0_i32_0 : i32, i32, i32, i32
  }
}

</mosaic_0001>

<bundles_post_ra>
// kernel: tile.63
= control target key start
LH: loop header
LB: loop body
LE: loop exit
PB: predicated region body
PF: predicated region fallthrough
CT: control target
= control target key end

     0   :  { %s28_s0 = inlined_call_operand.vmem [shape: f32[4], index: 0, kind: input, shape index: {}]   ;;  %s29_s1 = inlined_call_operand.vmem [shape: f32[16,4], index: 1, kind: output, shape index: {}]  }
   0x1   :  { %v4_v0 = vld [vmem:[%s28_s0] ss:$0 sm:$0xff] }
   0x2   :  { %5 = vst [vmem:[%s29_s1] sm:$0xff] %v4_v0 }
   0x3   :  { %8 = vst [vmem:[%s29_s1 + $0x8] sm:$0xff] %v4_v0 }

// kernel: tile.64
= control target key start
LH: loop header
LB: loop body
LE: loop exit
PB: predicated region body
PF: predicated region fallthrough
CT: control target
= control target key end

     0   :  { %s131_s10 = smov 60   ;;  %s132_s11 = smov 52   ;;  %vm3_vm0 = vcmask 31744   ;;  %vm9_vm1 = vcmask 523744   ;;  %vm15_vm2 = vcmask 490944   ;;  %vm21_vm3 = vcmask 458144   ;;  %s207_s0 = inlined_call_operand.vmem [shape: f32[16,4], index: 0, kind: input, shape index: {}]   ;;  %s208_s1 = inlined_call_operand.vmem [shape: f32[1,64], index: 1, kind: output, shape index: {}]  }
   0x1   :  { %v101_v0 = vld [vmem:[%s207_s0 + $0xf] sm:$0x1]   ;;  %v103_v1 = vld [vmem:[%s207_s0 + $0xd] sm:$0x1]   ;;  %v105_v2 = vld [vmem:[%s207_s0 + $0xb] sm:$0x1]  }
   0x2   :  { %7 = vrot.lane.b32.xlu0 %v101_v0, %s131_s10  ;;  %19 = vrot.lane.b32.xlu1 %v103_v1, %s132_s11  ;;  %s133_s14 = smov 44   ;;  %v102_v3 = vld [vmem:[%s207_s0 + $0xe] sm:$0x1]   ;;  %v104_v4 = vld [vmem:[%s207_s0 + $0xc] sm:$0x1]   ;;  %s134_s19 = smov 56  }
   0x3   :  { %31 = vrot.lane.b32.xlu2 %v105_v2, %s133_s14  ;;  %s135_s20 = smov 48   ;;  %v106_v5 = vld [vmem:[%s207_s0 + $0xa] sm:$0x1]   ;;  %s136_s23 = smov 40   ;;  %v107_v6 = vld [vmem:[%s207_s0 + $0x9] sm:$0x1]  }
   0x4   :  { %v108_v7 = vld [vmem:[%s207_s0 + $0x8] sm:$0x1]   ;;  %s137_s28 = smov 36   ;;  %s138_s29 = smov 32   ;;  %v109_v8 = vld [vmem:[%s207_s0 + $0x7] sm:$0x1]  }
   0x5   :  { %s139_s3 = smov 28   ;;  %v110_v9 = vld [vmem:[%s207_s0 + $0x6] sm:$0x1]   ;;  %v111_v10 = vld [vmem:[%s207_s0 + $0x5] sm:$0x1]   ;;  %s140_s8 = smov 24  }
   0x6   :  { %s141_s9 = smov 20   ;;  %v112_v11 = vld [vmem:[%s207_s0 + $0x4] sm:$0x1]   ;;  %s142_s12 = smov 16   ;;  %v113_v12 = vld [vmem:[%s207_s0 + $0x3] sm:$0x1]  }
   0x7   :  { %v114_v13 = vld [vmem:[%s207_s0 + $0x2] sm:$0x1]   ;;  %s143_s17 = smov 12   ;;  %s144_s18 = smov 8   ;;  %v115_v14 = vld [vmem:[%s207_s0 + $0x1] sm:$0x1]  }
   0x8   :  { %s145_s21 = smov 4   ;;  %v2_v15 = vld [vmem:[%s207_s0] sm:$0x1]   ;;  %vm27_vm4 = vcmask 425344   ;;  %vm33_vm5 = vcmask 392544   ;;  %vm39_vm6 = vcmask 359744  }
   0x9   :  { %4 = vst.msk [vmem:[#allocation0] sm:$0x1] %vm3_vm0, %v2_v15   ;;  %vm45_vm7 = vcmask 326944   ;;  %vm51_vm8 = vcmask 294144   ;;  %vm57_vm9 = vcmask 261344   ;;  %vm63_vm10 = vcmask 228544  }
   0xa   :  { %13 = vrot.lane.b32.xlu0 %v102_v3, %s134_s19  ;;  %25 = vrot.lane.b32.xlu1 %v104_v4, %s135_s20  ;;  %vm69_vm11 = vcmask 195744   ;;  %vm75_vm12 = vcmask 162944   ;;  %vm81_vm13 = vcmask 130144   ;;  %vm87_vm14 = vcmask 97344  }
   0xb   :  { %37 = vrot.lane.b32.xlu2 %v106_v5, %s136_s23  ;;  %vm93_vm15 = vcmask 64544  }
  0x12   :  { %43 = vrot.lane.b32.xlu0 %v107_v6, %s137_s28  ;;  %49 = vrot.lane.b32.xlu1 %v108_v7, %s138_s29 }
  0x13   :  { %55 = vrot.lane.b32.xlu2 %v109_v8, %s139_s3 }
  0x1a   :  { %61 = vrot.lane.b32.xlu0 %v110_v9, %s140_s8  ;;  %67 = vrot.lane.b32.xlu1 %v111_v10, %s141_s9 }
  0x1b   :  { %73 = vrot.lane.b32.xlu2 %v112_v11, %s142_s12 }
  0x22   :  { %79 = vrot.lane.b32.xlu0 %v113_v12, %s143_s17  ;;  %85 = vrot.lane.b32.xlu1 %v114_v13, %s144_s18 }
  0x23   :  { %91 = vrot.lane.b32.xlu2 %v115_v14, %s145_s21 }
  0x5d   :  { %v32_v16 = vpop.permute.xlu2 %31  }
  0x65   :  { %v38_v17 = vpop.permute.xlu2 %37  }
  0x6d   :  { %v56_v18 = vpop.permute.xlu2 %55  }
  0x74   :  { %v8_v19 = vpop.permute.xlu0 %7   ;;  %v20_v20 = vpop.permute.xlu1 %19  }
  0x75   :  { %10 = vst.msk [vmem:[#allocation0] sm:$0x1] %vm9_vm1, %v8_v19   ;;  %v74_v21 = vpop.permute.xlu2 %73  }
  0x7c   :  { %v14_v22 = vpop.permute.xlu0 %13   ;;  %v26_v23 = vpop.permute.xlu1 %25  }
  0x7d   :  { %16 = vst.msk [vmem:[#allocation0] sm:$0x1] %vm15_vm2, %v14_v22   ;;  %v92_v24 = vpop.permute.xlu2 %91  }
  0x7e   :  { %22 = vst.msk [vmem:[#allocation0] sm:$0x1] %vm21_vm3, %v20_v20  }
  0x7f   :  { %28 = vst.msk [vmem:[#allocation0] sm:$0x1] %vm27_vm4, %v26_v23  }
  0x80   :  { %34 = vst.msk [vmem:[#allocation0] sm:$0x1] %vm33_vm5, %v32_v16  }
  0x81   :  { %40 = vst.msk [vmem:[#allocation0] sm:$0x1] %vm39_vm6, %v38_v17  }
  0x84   :  { %v44_v25 = vpop.permute.xlu0 %43   ;;  %v50_v26 = vpop.permute.xlu1 %49  }
  0x85   :  { %46 = vst.msk [vmem:[#allocation0] sm:$0x1] %vm45_vm7, %v44_v25  }
  0x86   :  { %52 = vst.msk [vmem:[#allocation0] sm:$0x1] %vm51_vm8, %v50_v26  }
  0x87   :  { %58 = vst.msk [vmem:[#allocation0] sm:$0x1] %vm57_vm9, %v56_v18  }
  0x8c   :  { %v62_v27 = vpop.permute.xlu0 %61   ;;  %v68_v28 = vpop.permute.xlu1 %67  }
  0x8d   :  { %64 = vst.msk [vmem:[#allocation0] sm:$0x1] %vm63_vm10, %v62_v27  }
  0x8e   :  { %70 = vst.msk [vmem:[#allocation0] sm:$0x1] %vm69_vm11, %v68_v28  }
  0x8f   :  { %76 = vst.msk [vmem:[#allocation0] sm:$0x1] %vm75_vm12, %v74_v21  }
  0x94   :  { %v80_v29 = vpop.permute.xlu0 %79   ;;  %v86_v30 = vpop.permute.xlu1 %85  }
  0x95   :  { %82 = vst.msk [vmem:[#allocation0] sm:$0x1] %vm81_vm13, %v80_v29  }
  0x96   :  { %88 = vst.msk [vmem:[#allocation0] sm:$0x1] %vm87_vm14, %v86_v30  }
  0x97   :  { %94 = vst.msk [vmem:[#allocation0] sm:$0x1] %vm93_vm15, %v92_v24  }
  0x9e   :  { %v97_v31 = vld [vmem:[#allocation0] sm:$0x1] }
  0x9f   :  { %100 = vst [vmem:[%s208_s1] sm:$0x1] %v97_v31 }

// kernel: tile.84
= control target key start
LH: loop header
LB: loop body
LE: loop exit
PB: predicated region body
PF: predicated region fallthrough
CT: control target
= control target key end

     0   :  { %s131_s10 = smov 60   ;;  %s132_s11 = smov 52   ;;  %vm3_vm0 = vcmask 31744   ;;  %vm9_vm1 = vcmask 523744   ;;  %vm15_vm2 = vcmask 490944   ;;  %vm21_vm3 = vcmask 458144   ;;  %s207_s0 = inlined_call_operand.vmem [shape: f32[16,4], index: 0, kind: input, shape index: {}]   ;;  %s208_s1 = inlined_call_operand.vmem [shape: f32[1,1,64], index: 1, kind: output, shape index: {}]  }
   0x1   :  { %v101_v0 = vld [vmem:[%s207_s0 + $0xf] sm:$0x1]   ;;  %v103_v1 = vld [vmem:[%s207_s0 + $0xd] sm:$0x1]   ;;  %v105_v2 = vld [vmem:[%s207_s0 + $0xb] sm:$0x1]  }
   0x2   :  { %7 = vrot.lane.b32.xlu0 %v101_v0, %s131_s10  ;;  %19 = vrot.lane.b32.xlu1 %v103_v1, %s132_s11  ;;  %s133_s14 = smov 44   ;;  %v102_v3 = vld [vmem:[%s207_s0 + $0xe] sm:$0x1]   ;;  %v104_v4 = vld [vmem:[%s207_s0 + $0xc] sm:$0x1]   ;;  %s134_s19 = smov 56  }
   0x3   :  { %31 = vrot.lane.b32.xlu2 %v105_v2, %s133_s14  ;;  %s135_s20 = smov 48   ;;  %v106_v5 = vld [vmem:[%s207_s0 + $0xa] sm:$0x1]   ;;  %s136_s23 = smov 40   ;;  %v107_v6 = vld [vmem:[%s207_s0 + $0x9] sm:$0x1]  }
   0x4   :  { %v108_v7 = vld [vmem:[%s207_s0 + $0x8] sm:$0x1]   ;;  %s137_s28 = smov 36   ;;  %s138_s29 = smov 32   ;;  %v109_v8 = vld [vmem:[%s207_s0 + $0x7] sm:$0x1]  }
   0x5   :  { %s139_s3 = smov 28   ;;  %v110_v9 = vld [vmem:[%s207_s0 + $0x6] sm:$0x1]   ;;  %v111_v10 = vld [vmem:[%s207_s0 + $0x5] sm:$0x1]   ;;  %s140_s8 = smov 24  }
   0x6   :  { %s141_s9 = smov 20   ;;  %v112_v11 = vld [vmem:[%s207_s0 + $0x4] sm:$0x1]   ;;  %s142_s12 = smov 16   ;;  %v113_v12 = vld [vmem:[%s207_s0 + $0x3] sm:$0x1]  }
   0x7   :  { %v114_v13 = vld [vmem:[%s207_s0 + $0x2] sm:$0x1]   ;;  %s143_s17 = smov 12   ;;  %s144_s18 = smov 8   ;;  %v115_v14 = vld [vmem:[%s207_s0 + $0x1] sm:$0x1]  }
   0x8   :  { %s145_s21 = smov 4   ;;  %v2_v15 = vld [vmem:[%s207_s0] sm:$0x1]   ;;  %vm27_vm4 = vcmask 425344   ;;  %vm33_vm5 = vcmask 392544   ;;  %vm39_vm6 = vcmask 359744  }
   0x9   :  { %4 = vst.msk [vmem:[#allocation0] sm:$0x1] %vm3_vm0, %v2_v15   ;;  %vm45_vm7 = vcmask 326944   ;;  %vm51_vm8 = vcmask 294144   ;;  %vm57_vm9 = vcmask 261344   ;;  %vm63_vm10 = vcmask 228544  }
   0xa   :  { %13 = vrot.lane.b32.xlu0 %v102_v3, %s134_s19  ;;  %25 = vrot.lane.b32.xlu1 %v104_v4, %s135_s20  ;;  %vm69_vm11 = vcmask 195744   ;;  %vm75_vm12 = vcmask 162944   ;;  %vm81_vm13 = vcmask 130144   ;;  %vm87_vm14 = vcmask 97344  }
   0xb   :  { %37 = vrot.lane.b32.xlu2 %v106_v5, %s136_s23  ;;  %vm93_vm15 = vcmask 64544  }
  0x12   :  { %43 = vrot.lane.b32.xlu0 %v107_v6, %s137_s28  ;;  %49 = vrot.lane.b32.xlu1 %v108_v7, %s138_s29 }
  0x13   :  { %55 = vrot.lane.b32.xlu2 %v109_v8, %s139_s3 }
  0x1a   :  { %61 = vrot.lane.b32.xlu0 %v110_v9, %s140_s8  ;;  %67 = vrot.lane.b32.xlu1 %v111_v10, %s141_s9 }
  0x1b   :  { %73 = vrot.lane.b32.xlu2 %v112_v11, %s142_s12 }
  0x22   :  { %79 = vrot.lane.b32.xlu0 %v113_v12, %s143_s17  ;;  %85 = vrot.lane.b32.xlu1 %v114_v13, %s144_s18 }
  0x23   :  { %91 = vrot.lane.b32.xlu2 %v115_v14, %s145_s21 }
  0x5d   :  { %v32_v16 = vpop.permute.xlu2 %31  }
  0x65   :  { %v38_v17 = vpop.permute.xlu2 %37  }
  0x6d   :  { %v56_v18 = vpop.permute.xlu2 %55  }
  0x74   :  { %v8_v19 = vpop.permute.xlu0 %7   ;;  %v20_v20 = vpop.permute.xlu1 %19  }
  0x75   :  { %10 = vst.msk [vmem:[#allocation0] sm:$0x1] %vm9_vm1, %v8_v19   ;;  %v74_v21 = vpop.permute.xlu2 %73  }
  0x7c   :  { %v14_v22 = vpop.permute.xlu0 %13   ;;  %v26_v23 = vpop.permute.xlu1 %25  }
  0x7d   :  { %16 = vst.msk [vmem:[#allocation0] sm:$0x1] %vm15_vm2, %v14_v22   ;;  %v92_v24 = vpop.permute.xlu2 %91  }
  0x7e   :  { %22 = vst.msk [vmem:[#allocation0] sm:$0x1] %vm21_vm3, %v20_v20  }
  0x7f   :  { %28 = vst.msk [vmem:[#allocation0] sm:$0x1] %vm27_vm4, %v26_v23  }
  0x80   :  { %34 = vst.msk [vmem:[#allocation0] sm:$0x1] %vm33_vm5, %v32_v16  }
  0x81   :  { %40 = vst.msk [vmem:[#allocation0] sm:$0x1] %vm39_vm6, %v38_v17  }
  0x84   :  { %v44_v25 = vpop.permute.xlu0 %43   ;;  %v50_v26 = vpop.permute.xlu1 %49  }
  0x85   :  { %46 = vst.msk [vmem:[#allocation0] sm:$0x1] %vm45_vm7, %v44_v25  }
  0x86   :  { %52 = vst.msk [vmem:[#allocation0] sm:$0x1] %vm51_vm8, %v50_v26  }
  0x87   :  { %58 = vst.msk [vmem:[#allocation0] sm:$0x1] %vm57_vm9, %v56_v18  }
  0x8c   :  { %v62_v27 = vpop.permute.xlu0 %61   ;;  %v68_v28 = vpop.permute.xlu1 %67  }
  0x8d   :  { %64 = vst.msk [vmem:[#allocation0] sm:$0x1] %vm63_vm10, %v62_v27  }
  0x8e   :  { %70 = vst.msk [vmem:[#allocation0] sm:$0x1] %vm69_vm11, %v68_v28  }
  0x8f   :  { %76 = vst.msk [vmem:[#allocation0] sm:$0x1] %vm75_vm12, %v74_v21  }
  0x94   :  { %v80_v29 = vpop.permute.xlu0 %79   ;;  %v86_v30 = vpop.permute.xlu1 %85  }
  0x95   :  { %82 = vst.msk [vmem:[#allocation0] sm:$0x1] %vm81_vm13, %v80_v29  }
  0x96   :  { %88 = vst.msk [vmem:[#allocation0] sm:$0x1] %vm87_vm14, %v86_v30  }
  0x97   :  { %94 = vst.msk [vmem:[#allocation0] sm:$0x1] %vm93_vm15, %v92_v24  }
  0x9e   :  { %v97_v31 = vld [vmem:[#allocation0] sm:$0x1] }
  0x9f   :  { %100 = vst [vmem:[%s208_s1] sm:$0x1] %v97_v31 }

// kernel: bluestack_forward.7
= control target key start
LH: loop header
LB: loop body
LE: loop exit
PB: predicated region body
PF: predicated region fallthrough
CT: control target
= control target key end

     0   :  { %s417_s12 = smov 0   ;;  %s419_s13 = smov 0   ;;  %s471_s0 = inlined_call_operand.vmem [shape: f32[2,16,64], index: 0, kind: input, shape index: {}]   ;;  %s472_s1 = inlined_call_operand.vmem [shape: f32[1,1,64], index: 1, kind: input, shape index: {}]   ;;  %s473_s2 = inlined_call_operand.vmem [shape: f32[1,1,64], index: 2, kind: input, shape index: {}]   ;;  %s474_s3 = inlined_call_operand.vmem [shape: f32[2,16,64], index: 3, kind: output, shape index: {}]  }
   0x1   :  { %s421_s14 = smov 0   ;;  %s423_s15 = smov 0  }
   0x2   :  { %s425_s16 = smov 0  }
   0x3 LB: > { %s22_s17 = sadd.s32 1, %s387_s14  ;;  %s25_s18 = sadd.s32 1, %s391_s15  ;;  %s395_s16 = sphi %s425_s16, %s13_s16   ;;  %s391_s15 = sphi %s423_s15, %s478_s15   ;;  %s387_s14 = sphi %s421_s14, %s477_s14   ;;  %s383_s13 = sphi %s419_s13, %s476_s13   ;;  %s379_s12 = sphi %s417_s12, %s475_s12  }
   0x4   : > { %p23_p0 = scmp.ge.s32.totalorder %s22_s17, 2  ;;  %p308_p1 = scmp.ge.s32.totalorder %s395_s16, 1 }
   0x5   : > { %p156_p2 = scmp.lt.s32.totalorder %s395_s16, 5 }
   0x6   : > { %s480_s17 = smov (%p23_p0, %s22_s17), 0  ;;  %s482_s18 = smov (!%p23_p0, %s25_s18), %s391_s15 }
   0x7   : > { %p157_p3 = pnand %p308_p1, %p156_p2  ;;  %p27_p4 = scmp.ge.s32.totalorder %s482_s18, 2 }
   0x8   : > { %p186_p5 = scmp.lt.s32.totalorder (!%p157_p3), %s383_s13, 1  ;;  %p188_p6 = scmp.lt.s32.totalorder (!%p157_p3), %s379_s12, 1 }
   0x9   : > { %s484_s18 = smov (%p27_p4, %s482_s18), 0  ;;  %160 = sbr.rel (%p157_p3) target bundleno = 28 (0x1c), region = 32 }
   0xe   : > { %s486_s13 = smov (!%p186_p5, %s383_s13), 1  ;;  %s488_s12 = smov (!%p188_p6, %s379_s12), 1  ;;  %v355_v0 = vld [vmem:[%s472_s1] ss:$0 sm:$0xff]  ;;  %vm216_vm1 = vcmask 523264  }
   0xf   : > { %s309_s19 = sshll.u32 %s486_s13, 1  ;;  %v356_v1 = vld [vmem:[%s473_s2] ss:$0 sm:$0xff] }
  0x10   : > { %s191_s20 = sadd.s32 %s309_s19, %s488_s12 }
  0x11   : > { %s310_s23 = sshll.u32 %s191_s20, 3 }
  0x12   : > { %s193_s26 = scalar_lea.vmem %s471_s0, %s310_s23  ;;  %s201_s4 = scalar_lea.vmem %s474_s3, %s310_s23 }
  0x13   : > { %v202_v2 = vld [vmem:[%s193_s26] sm:$0xff] }
  0x14   : > { %v207_v3 = vsub.f32 %v202_v2, %v355_v0 }
  0x16   : > { %v212_v4 = vmul.f32 %v356_v1, %v207_v3 }
  0x18   : > { %vm213_vm0 = vcmp.ge.f32.partialorder %v212_v4, 0.0  ;;  %v214_v5 = vmul.f32 0.01, %v212_v4 }
  0x1a   : > { %v215_v6 = vsel %vm213_vm0, %v212_v4, %v214_v5 }
  0x1b   : > { %217 = vst.msk [vmem:[%s201_s4] sm:$0xff] %vm216_vm1, %v215_v6 }
  0x1c PF: > { %s13_s16 = sadd.s32 1, %s395_s16   ;;  %s475_s12 = smov %s387_s14 }
  0x1d   : > { %p10_p7 = scmp.ge.s32.totalorder %s13_s16, 6   ;;  %s476_s13 = smov %s391_s15 }
  0x1e   : > { %s477_s14 = smov %s480_s17  ;;  %s478_s15 = smov %s484_s18 }
  0x1f   :  { %12 = sbr.rel (!%p10_p7) target bundleno = 3 (0x3), region = 62 }

// kernel: bluestack_forward.6
= control target key start
LH: loop header
LB: loop body
LE: loop exit
PB: predicated region body
PF: predicated region fallthrough
CT: control target
= control target key end

     0   :  { %s1002_s21 = smov 0   ;;  %s1004_s22 = smov 0   ;;  %s1138_s0 = inlined_call_operand.vmem [shape: f32[2,24,72], index: 0, kind: input, shape index: {}, may-alias: {0,1}]   ;;  %s1139_s1 = inlined_call_operand.vmem [shape: f32[2,24,72], index: 1, kind: input, shape index: {}, may-alias: {0,1}]   ;;  %s1140_s2 = inlined_call_operand.vmem [shape: bf16[3,72,64], index: 2, kind: input, shape index: {}]   ;;  %s1141_s3 = inlined_call_operand.vmem [shape: f32[1,64], index: 3, kind: input, shape index: {}]   ;;  %s1142_s4 = inlined_call_operand.vmem [shape: bf16[64,4], index: 4, kind: input, shape index: {}]   ;;  %s1143_s5 = inlined_call_operand.vmem [shape: f32[2,16,64], index: 5, kind: output, shape index: {0}]   ;;  %s1144_s6 = inlined_call_operand.vmem [shape: f32[2,2,2,4], index: 6, kind: output, shape index: {1}]  }
   0x1   :  { %s1006_s23 = smov 0   ;;  %s1008_s24 = smov 0  }
   0x2   :  { %s1010_s25 = smov 0  }
   0x3 LB: > { %s26_s26 = sadd.s32 1, %s957_s23  ;;  %s29_s27 = sadd.s32 1, %s961_s24  ;;  %s965_s25 = sphi %s1010_s25, %s17_s25   ;;  %s961_s24 = sphi %s1008_s24, %s1148_s24   ;;  %s957_s23 = sphi %s1006_s23, %s1147_s23   ;;  %s953_s22 = sphi %s1004_s22, %s1146_s22   ;;  %s949_s21 = sphi %s1002_s21, %s1145_s21  }
   0x4   : > { %p27_p0 = scmp.ge.s32.totalorder %s26_s26, 2  ;;  %p773_p1 = scmp.ge.s32.totalorder %s965_s25, 1 }
   0x5   : > { %p255_p2 = scmp.lt.s32.totalorder %s965_s25, 5 }
   0x6   : > { %s1150_s26 = smov (%p27_p0, %s26_s26), 0  ;;  %s1152_s27 = smov (!%p27_p0, %s29_s27), %s961_s24 }
   0x7   : > { %p256_p3 = pnand %p773_p1, %p255_p2  ;;  %p31_p4 = scmp.ge.s32.totalorder %s1152_s27, 2 }
   0x8   : > { %p308_p5 = scmp.lt.s32.totalorder (!%p256_p3), %s953_s22, 1  ;;  %p310_p6 = scmp.lt.s32.totalorder (!%p256_p3), %s949_s21, 2 }
   0x9   : > { %s1154_s27 = smov (%p31_p4, %s1152_s27), 0  ;;  %259 = sbr.rel (%p256_p3) target bundleno = 339 (0x153), region = 40 }
   0xa   : > { %s316_s10 = sadd.s32 (!%p256_p3), 1, %s949_s21  ;;  %p328_p8 = scmp.lt.s32.totalorder (!%p256_p3), %s949_s21, 1 }
   0xb   : > { %p319_p7 = scmp.lt.s32.totalorder (!%p256_p3), %s316_s10, 2 }
   0xe   : > { %v363_v0 = vld [vmem:[%s1140_s2 + $0x20] sm:$0xf]  ;;  %v805_v1 = vld [vmem:[%s1140_s2 + $0x44] sm:$0xf]  ;;  %v831_v4 = vld [vmem:[%s1140_s2 + $0x68] sm:$0xf] }
   0xf   : > { %v381_v2 = vunpack.c.l.b16 %v363_v0  ;;  %v441_v3 = vunpack.c.l.b16 %v805_v1  ;;  %vm394_vm0 = vcmask 1043456   ;;  %v500_v5 = vunpack.c.l.b16 %v831_v4  ;;  %s1156_s22 = smov (!%p308_p5, %s953_s22), 1  ;;  %v884_v11 = vld [vmem:[%s1142_s4 + $0x18] sm:$0xff]  ;;  %v880_v15 = vld [vmem:[%s1140_s2 + $0x60] sm:$0xff]  ;;  %v871_v16 = vld [vmem:[%s1140_s2 + $0x10] sm:$0xff]  ;;  %s1158_s10 = smov (!%p319_p7, %s316_s10), 2 }
  0x10   : > { %s311_s11 = scalar_select %p310_p6, %s949_s21, 2  ;;  %v872_v13 = vld [vmem:[%s1140_s2 + $0x18] sm:$0xff]  ;;  %572 = vmatpush.bf16.msra.mxu3 %v884_v11  ;;  %vm344_vm1 = vcmask 588800   ;;  %vm347_vm2 = vcmask 582656   ;;  %v870_v20 = vld [vmem:[%s1140_s2 + $0x8] sm:$0xff]  ;;  %v878_v22 = vld [vmem:[%s1140_s2 + $0x50] sm:$0xff] }
  0x11   : > { %v386_v6 = vpack.c.b16 %v381_v2, %v381_v2  ;;  %v446_v7 = vpack.c.b16 %v441_v3, %v441_v3  ;;  %v505_v8 = vpack.c.b16 %v500_v5, %v500_v5  ;;  %s885_s12 = smul.u32 3, %s1156_s22  ;;  %v876_v14 = vld [vmem:[%s1140_s2 + $0x3c] sm:$0xff]  ;;  %v875_v17 = vld [vmem:[%s1140_s2 + $0x34] sm:$0xff]  ;;  %v874_v21 = vld [vmem:[%s1140_s2 + $0x2c] sm:$0xff]  ;;  %s1160_s21 = smov (!%p328_p8, %s949_s21), 1  ;;  %vm530_vm3 = vcmask 523264  }
  0x12   : > { %v879_v19 = vld [vmem:[%s1140_s2 + $0x58] sm:$0xff]  ;;  %v869_v24 = vld [vmem:[%s1140_s2] sm:$0xff]  ;;  %v877_v27 = vld [vmem:[%s1140_s2 + $0x48] sm:$0xff]  ;;  %vm581_vm4 = vcmask 31744   ;;  %vm614_vm5 = vcmask 1040384   ;;  %vm616_vm6 = vcmask 25600  }
  0x13   : > { %v396_v9 = vsel %vm394_vm0, %v386_v6, 0  ;;  %v455_v10 = vsel %vm394_vm0, %v446_v7, 0  ;;  %v514_v12 = vsel %vm394_vm0, %v505_v8, 0  ;;  %s313_s28 = sadd.s32 %s885_s12, %s311_s11  ;;  %s322_s17 = sadd.s32 %s885_s12, %s1158_s10  ;;  %v873_v25 = vld [vmem:[%s1140_s2 + $0x24] sm:$0xff]  ;;  %v883_v33 = vld [vmem:[%s1142_s4 + $0x10] sm:$0xff] }
  0x14   : > { %401 = vmatpush.bf16.msra.mxu0 %v396_v9  ;;  %460 = vmatpush.bf16.msra.mxu1 %v455_v10  ;;  %s774_s29 = sshll.u32 %s313_s28, 3  ;;  %s775_s18 = sshll.u32 %s322_s17, 3  ;;  %v882_v34 = vld [vmem:[%s1142_s4 + $0x8] sm:$0xff]  ;;  %v881_v35 = vld [vmem:[%s1142_s4] sm:$0xff] }
  0x15   : > { %519 = vmatpush.bf16.msra.mxu2 %v514_v12  ;;  %s315_s8 = scalar_lea.vmem %s1138_s0, %s774_s29  ;;  %573 = vmatpush.bf16.msra.mxu3 %v883_v33  ;;  %v926_v36 = vld [vmem:[%s1141_s3] ss:$0 sm:$0xff] }
  0x16   : > { %v343_v18 = vld [vmem:[%s315_s8] sm:$0xff]  ;;  %s324_s8 = scalar_lea.vmem %s1139_s1, %s775_s18 }
  0x17   : > { %345 = vst.msk [vmem:[#allocation2] sm:$0xff] %vm344_vm1, %v343_v18  ;;  %v346_v23 = vld [vmem:[%s324_s8] sm:$0x3]  ;;  %s776_s8 = sshll.u32 %s1156_s22, 1 }
  0x18   : > { %402 = vmatpush.bf16.msra.mxu0 %v872_v13  ;;  %461 = vmatpush.bf16.msra.mxu1 %v876_v14  ;;  %348 = vst.msk [vmem:[#allocation2 + $0x8] sm:$0x3] %vm347_vm2, %v346_v23  ;;  %s1113_s9 = sadd.s32 %s776_s8, %s1160_s21 }
  0x19   : > { %520 = vmatpush.bf16.msra.mxu2 %v880_v15  ;;  %574 = vmatpush.bf16.msra.mxu3 %v882_v34  ;;  %s777_s13 = sshll.u32 %s1113_s9, 3  ;;  %s779_s21 = sshll.u32 %s1113_s9, 1 }
  0x1a   : > { %s333_s14 = scalar_lea.vmem %s1143_s5, %s777_s13  ;;  %s341_s11 = scalar_lea.vmem %s1144_s6, %s779_s21 }
  0x1c   : > { %403 = vmatpush.bf16.msra.mxu0 %v871_v16  ;;  %462 = vmatpush.bf16.msra.mxu1 %v875_v17 }
  0x1d   : > { %521 = vmatpush.bf16.msra.mxu2 %v879_v19  ;;  %575 = vmatpush.bf16.msra.mxu3 %v881_v35 }
  0x1e   : > { %v353_v26 = vld [vmem:[#allocation2] sm:$0xff] }
  0x1f   : > { %v354_v28 = vpack.c.bf16 %v353_v26, %v353_v26  ;;  %v412_v29 = vld [vmem:[#allocation2 + $0x1] sm:$0xff] }
  0x20   : > { %404 = vmatpush.bf16.msra.mxu0 %v870_v20  ;;  %463 = vmatpush.bf16.msra.mxu1 %v874_v21  ;;  %v471_v30 = vld [vmem:[#allocation2 + $0x2] sm:$0xff]  ;;  %v413_v31 = vpack.c.bf16 %v412_v29, %v412_v29 }
  0x21   : > { %522 = vmatpush.bf16.msra.mxu2 %v878_v22  ;;  %v472_v32 = vpack.c.bf16 %v471_v30, %v471_v30  ;;  %598 = vmatpush.bf16.msrb.mxu3 %v884_v11 }
  0x24   : > { %405 = vmatpush.bf16.msra.mxu0 %v869_v24  ;;  %464 = vmatpush.bf16.msra.mxu1 %v873_v25 }
  0x25   : > { %523 = vmatpush.bf16.msra.mxu2 %v877_v27  ;;  %599 = vmatpush.bf16.msrb.mxu3 %v883_v33 }
  0x27   : > { %796 = vmatmul.msk.bf16.vlgmr.msra.gmra.mxu0 %vm344_vm1, %v354_v28  ;;  %822 = vmatmul.msk.bf16.vlgmr.msra.gmra.mxu1 %vm344_vm1, %v413_v31 }
  0x28   : > { %848 = vmatmul.msk.bf16.vlgmr.msra.gmra.mxu2 %vm344_vm1, %v472_v32 }
  0x29   : > { %600 = vmatpush.bf16.msrb.mxu3 %v882_v34 }
  0x2d   : > { %601 = vmatpush.bf16.msrb.mxu3 %v881_v35 }
  0xa4   : > { %v407_v37 = vpop.f32.mrf.mxu0  ;;  %v466_v39 = vpop.f32.mrf.mxu1 }
  0xa5   : > { %v411_v38 = vadd.f32 %v926_v36, %v407_v37 }
  0xa7   : > { %v470_v40 = vadd.f32 %v466_v39, %v411_v38 }
  0xab   : > { %v525_v41 = vpop.f32.mrf.mxu2 }
  0xac   : > { %v529_v42 = vadd.f32 %v525_v41, %v470_v40  ;;  %v409_v43 = vpop.f32.mrf.mxu0  ;;  %v468_v44 = vpop.f32.mrf.mxu1 }
  0xae   : > { %531 = vst.msk [vmem:[%s333_s14] sm:$0xff] %vm530_vm3, %v529_v42  ;;  %v540_v45 = vpack.c.bf16 %v529_v42, %v529_v42  ;;  %v589_v47 = vmul.f32 %v529_v42, %v529_v42 }
  0xb0   : > { %865 = vmatmul.msk.bf16.vlgmr.msra.gmra.mxu3 %vm530_vm3, %v540_v45  ;;  %v590_v48 = vpack.c.bf16 %v589_v47, %v589_v47 }
  0xb3   : > { %v527_v46 = vpop.f32.mrf.mxu2 }
  0xc0   : > { %866 = vmatmul.msk.bf16.vlgmr.msrb.gmra.mxu3 %vm530_vm3, %v590_v48 }
 0x133   : > { %v577_v49 = vpop.f32.mrf.mxu3 }
 0x134   : > { %v582_v50 = vsel %vm581_vm4, %v577_v49, 0.0 }
 0x135   : > { %v583_v51 = vrot.slane %v582_v50, 4 }
 0x137   : > { %v584_v53 = vadd.f32 %v583_v51, %v582_v50 }
 0x139   : > { %v585_v54 = vrot.slane %v584_v53, 2 }
 0x13b   : > { %v579_v52 = vpop.f32.mrf.mxu3  ;;  %v586_v58 = vadd.f32 %v585_v54, %v584_v53 }
 0x13d   : > { %v587_v61 = vrot.slane %v586_v58, 1 }
 0x13f   : > { %v588_v1 = vadd.f32 %v587_v61, %v586_v58 }
 0x143   : > { %v603_v55 = vpop.f32.mrf.mxu3 }
 0x144   : > { %v607_v56 = vsel %vm581_vm4, %v603_v55, 0.0 }
 0x145   : > { %v608_v57 = vrot.slane %v607_v56, 4 }
 0x147   : > { %v609_v59 = vadd.f32 %v608_v57, %v607_v56 }
 0x149   : > { %v610_v60 = vrot.slane %v609_v59, 2 }
 0x14b   : > { %v611_v62 = vadd.f32 %v610_v60, %v609_v59  ;;  %v605_v63 = vpop.f32.mrf.mxu3 }
 0x14d   : > { %v612_v0 = vrot.slane %v611_v62, 1 }
 0x14f   : > { %v613_v2 = vadd.f32 %v612_v0, %v611_v62 }
 0x151   : > { %v615_v3 = vsel %vm614_vm5, %v588_v1, %v613_v2 }
 0x152   : > { %617 = vst.msk [vmem:[%s341_s11] sm:$0x3] %vm616_vm6, %v615_v3 }
 0x153 PF: > { %s17_s25 = sadd.s32 1, %s965_s25   ;;  %s1145_s21 = smov %s957_s23 }
 0x154   : > { %p14_p9 = scmp.ge.s32.totalorder %s17_s25, 6   ;;  %s1146_s22 = smov %s961_s24 }
 0x155   : > { %s1147_s23 = smov %s1150_s26  ;;  %s1148_s24 = smov %s1154_s27 }
 0x156   :  { %16 = sbr.rel (!%p14_p9) target bundleno = 3 (0x3), region = 87 }

// kernel: bluestack_forward.10
= control target key start
LH: loop header
LB: loop body
LE: loop exit
PB: predicated region body
PF: predicated region fallthrough
CT: control target
= control target key end

     0   :  { %s1087_s24 = smov 0   ;;  %s1089_s25 = smov 0   ;;  %s1226_s0 = inlined_call_operand.vmem [shape: f32[2,24,72], index: 0, kind: input, shape index: {}, may-alias: {0,1}]   ;;  %s1227_s1 = inlined_call_operand.vmem [shape: f32[2,24,72], index: 1, kind: input, shape index: {}, may-alias: {0,1}]   ;;  %s1228_s2 = inlined_call_operand.vmem [shape: bf16[3,72,64], index: 2, kind: input, shape index: {}]   ;;  %s1229_s3 = inlined_call_operand.vmem [shape: f32[1,64], index: 3, kind: input, shape index: {}]   ;;  %s1230_s4 = inlined_call_operand.vmem [shape: bf16[64,4], index: 4, kind: input, shape index: {}]   ;;  %s1231_s5 = inlined_call_operand.vmem [shape: f32[2,16,64], index: 5, kind: input, shape index: {}]   ;;  %s1232_s6 = inlined_call_operand.vmem [shape: f32[2,16,64], index: 6, kind: output, shape index: {0}]   ;;  %s1233_s7 = inlined_call_operand.vmem [shape: f32[2,2,2,4], index: 7, kind: output, shape index: {1}]  }
   0x1   :  { %s1091_s26 = smov 0   ;;  %s1093_s27 = smov 0  }
   0x2   :  { %s1095_s28 = smov 0  }
   0x3 LB: > { %s27_s29 = sadd.s32 1, %s1037_s26  ;;  %s30_s30 = sadd.s32 1, %s1041_s27  ;;  %s1045_s28 = sphi %s1095_s28, %s18_s28   ;;  %s1041_s27 = sphi %s1093_s27, %s1237_s27   ;;  %s1037_s26 = sphi %s1091_s26, %s1236_s26   ;;  %s1033_s25 = sphi %s1089_s25, %s1235_s25   ;;  %s1029_s24 = sphi %s1087_s24, %s1234_s24  }
   0x4   : > { %p28_p0 = scmp.ge.s32.totalorder %s27_s29, 2  ;;  %p851_p1 = scmp.ge.s32.totalorder %s1045_s28, 1 }
   0x5   : > { %p295_p2 = scmp.lt.s32.totalorder %s1045_s28, 5 }
   0x6   : > { %s1239_s29 = smov (%p28_p0, %s27_s29), 0  ;;  %s1241_s30 = smov (!%p28_p0, %s30_s30), %s1041_s27 }
   0x7   : > { %p296_p3 = pnand %p851_p1, %p295_p2  ;;  %p32_p4 = scmp.ge.s32.totalorder %s1241_s30, 2 }
   0x8   : > { %p358_p5 = scmp.lt.s32.totalorder (!%p296_p3), %s1033_s25, 1  ;;  %p360_p6 = scmp.lt.s32.totalorder (!%p296_p3), %s1029_s24, 2 }
   0x9   : > { %s1243_s30 = smov (%p32_p4, %s1241_s30), 0  ;;  %299 = sbr.rel (%p296_p3) target bundleno = 341 (0x155), region = 44 }
   0xa   : > { %s366_s14 = sadd.s32 (!%p296_p3), 1, %s1029_s24  ;;  %p378_p8 = scmp.lt.s32.totalorder (!%p296_p3), %s1029_s24, 1 }
   0xb   : > { %p369_p7 = scmp.lt.s32.totalorder (!%p296_p3), %s366_s14, 2 }
   0xe   : > { %v421_v0 = vld [vmem:[%s1228_s2 + $0x20] sm:$0xf]  ;;  %v885_v1 = vld [vmem:[%s1228_s2 + $0x44] sm:$0xf]  ;;  %v911_v4 = vld [vmem:[%s1228_s2 + $0x68] sm:$0xf] }
   0xf   : > { %v439_v2 = vunpack.c.l.b16 %v421_v0  ;;  %v499_v3 = vunpack.c.l.b16 %v885_v1  ;;  %vm452_vm0 = vcmask 1043456   ;;  %v558_v5 = vunpack.c.l.b16 %v911_v4  ;;  %s1245_s25 = smov (!%p358_p5, %s1033_s25), 1  ;;  %v964_v11 = vld [vmem:[%s1230_s4 + $0x18] sm:$0xff]  ;;  %v960_v15 = vld [vmem:[%s1228_s2 + $0x60] sm:$0xff]  ;;  %v951_v16 = vld [vmem:[%s1228_s2 + $0x10] sm:$0xff]  ;;  %s1247_s14 = smov (!%p369_p7, %s366_s14), 2 }
  0x10   : > { %s361_s15 = scalar_select %p360_p6, %s1029_s24, 2  ;;  %v952_v13 = vld [vmem:[%s1228_s2 + $0x18] sm:$0xff]  ;;  %632 = vmatpush.bf16.msra.mxu3 %v964_v11  ;;  %vm402_vm1 = vcmask 588800   ;;  %vm405_vm2 = vcmask 582656   ;;  %v950_v20 = vld [vmem:[%s1228_s2 + $0x8] sm:$0xff]  ;;  %v958_v22 = vld [vmem:[%s1228_s2 + $0x50] sm:$0xff] }
  0x11   : > { %v444_v6 = vpack.c.b16 %v439_v2, %v439_v2  ;;  %v504_v7 = vpack.c.b16 %v499_v3, %v499_v3  ;;  %v563_v8 = vpack.c.b16 %v558_v5, %v558_v5  ;;  %s965_s16 = smul.u32 3, %s1245_s25  ;;  %v956_v14 = vld [vmem:[%s1228_s2 + $0x3c] sm:$0xff]  ;;  %v955_v17 = vld [vmem:[%s1228_s2 + $0x34] sm:$0xff]  ;;  %v954_v21 = vld [vmem:[%s1228_s2 + $0x2c] sm:$0xff]  ;;  %s1249_s24 = smov (!%p378_p8, %s1029_s24), 1  ;;  %vm590_vm3 = vcmask 523264  }
  0x12   : > { %v959_v19 = vld [vmem:[%s1228_s2 + $0x58] sm:$0xff]  ;;  %v949_v24 = vld [vmem:[%s1228_s2] sm:$0xff]  ;;  %v957_v27 = vld [vmem:[%s1228_s2 + $0x48] sm:$0xff]  ;;  %vm641_vm4 = vcmask 31744   ;;  %vm674_vm5 = vcmask 1040384   ;;  %vm676_vm6 = vcmask 25600  }
  0x13   : > { %v454_v9 = vsel %vm452_vm0, %v444_v6, 0  ;;  %v513_v10 = vsel %vm452_vm0, %v504_v7, 0  ;;  %v572_v12 = vsel %vm452_vm0, %v563_v8, 0  ;;  %s363_s9 = sadd.s32 %s965_s16, %s361_s15  ;;  %s372_s22 = sadd.s32 %s965_s16, %s1247_s14  ;;  %v953_v25 = vld [vmem:[%s1228_s2 + $0x24] sm:$0xff]  ;;  %v963_v33 = vld [vmem:[%s1230_s4 + $0x10] sm:$0xff] }
  0x14   : > { %459 = vmatpush.bf16.msra.mxu0 %v454_v9  ;;  %518 = vmatpush.bf16.msra.mxu1 %v513_v10  ;;  %s852_s10 = sshll.u32 %s363_s9, 3  ;;  %s853_s23 = sshll.u32 %s372_s22, 3  ;;  %v962_v34 = vld [vmem:[%s1230_s4 + $0x8] sm:$0xff]  ;;  %v961_v35 = vld [vmem:[%s1230_s4] sm:$0xff] }
  0x15   : > { %577 = vmatpush.bf16.msra.mxu2 %v572_v12  ;;  %s365_s13 = scalar_lea.vmem %s1226_s0, %s852_s10  ;;  %s374_s17 = scalar_lea.vmem %s1227_s1, %s853_s23  ;;  %633 = vmatpush.bf16.msra.mxu3 %v963_v33  ;;  %v1006_v36 = vld [vmem:[%s1229_s3] ss:$0 sm:$0xff] }
  0x16   : > { %v401_v18 = vld [vmem:[%s365_s13] sm:$0xff]  ;;  %s854_s13 = sshll.u32 %s1245_s25, 1 }
  0x17   : > { %403 = vst.msk [vmem:[#allocation2] sm:$0xff] %vm402_vm1, %v401_v18  ;;  %v404_v23 = vld [vmem:[%s374_s17] sm:$0x3]  ;;  %s1198_s19 = sadd.s32 %s854_s13, %s1249_s24 }
  0x18   : > { %460 = vmatpush.bf16.msra.mxu0 %v952_v13  ;;  %519 = vmatpush.bf16.msra.mxu1 %v956_v14  ;;  %406 = vst.msk [vmem:[#allocation2 + $0x8] sm:$0x3] %vm405_vm2, %v404_v23  ;;  %s855_s14 = sshll.u32 %s1198_s19, 3  ;;  %s859_s24 = sshll.u32 %s1198_s19, 1 }
  0x19   : > { %578 = vmatpush.bf16.msra.mxu2 %v960_v15  ;;  %634 = vmatpush.bf16.msra.mxu3 %v962_v34  ;;  %s383_s15 = scalar_lea.vmem %s1231_s5, %s855_s14  ;;  %s391_s22 = scalar_lea.vmem %s1232_s6, %s855_s14 }
  0x1a   : > { %v588_v42 = vld [vmem:[%s383_s15] sm:$0xff]  ;;  %s399_s9 = scalar_lea.vmem %s1233_s7, %s859_s24 }
  0x1c   : > { %461 = vmatpush.bf16.msra.mxu0 %v951_v16  ;;  %520 = vmatpush.bf16.msra.mxu1 %v955_v17 }
  0x1d   : > { %579 = vmatpush.bf16.msra.mxu2 %v959_v19  ;;  %635 = vmatpush.bf16.msra.mxu3 %v961_v35 }
  0x1e   : > { %v411_v26 = vld [vmem:[#allocation2] sm:$0xff] }
  0x1f   : > { %v412_v28 = vpack.c.bf16 %v411_v26, %v411_v26  ;;  %v470_v29 = vld [vmem:[#allocation2 + $0x1] sm:$0xff] }
  0x20   : > { %462 = vmatpush.bf16.msra.mxu0 %v950_v20  ;;  %521 = vmatpush.bf16.msra.mxu1 %v954_v21  ;;  %v529_v30 = vld [vmem:[#allocation2 + $0x2] sm:$0xff]  ;;  %v471_v31 = vpack.c.bf16 %v470_v29, %v470_v29 }
  0x21   : > { %580 = vmatpush.bf16.msra.mxu2 %v958_v22  ;;  %v530_v32 = vpack.c.bf16 %v529_v30, %v529_v30  ;;  %658 = vmatpush.bf16.msrb.mxu3 %v964_v11 }
  0x24   : > { %463 = vmatpush.bf16.msra.mxu0 %v949_v24  ;;  %522 = vmatpush.bf16.msra.mxu1 %v953_v25 }
  0x25   : > { %581 = vmatpush.bf16.msra.mxu2 %v957_v27  ;;  %659 = vmatpush.bf16.msrb.mxu3 %v963_v33 }
  0x27   : > { %876 = vmatmul.msk.bf16.vlgmr.msra.gmra.mxu0 %vm402_vm1, %v412_v28  ;;  %902 = vmatmul.msk.bf16.vlgmr.msra.gmra.mxu1 %vm402_vm1, %v471_v31 }
  0x28   : > { %928 = vmatmul.msk.bf16.vlgmr.msra.gmra.mxu2 %vm402_vm1, %v530_v32 }
  0x29   : > { %660 = vmatpush.bf16.msrb.mxu3 %v962_v34 }
  0x2d   : > { %661 = vmatpush.bf16.msrb.mxu3 %v961_v35 }
  0xa4   : > { %v465_v37 = vpop.f32.mrf.mxu0  ;;  %v524_v39 = vpop.f32.mrf.mxu1 }
  0xa5   : > { %v469_v38 = vadd.f32 %v1006_v36, %v465_v37 }
  0xa7   : > { %v528_v40 = vadd.f32 %v524_v39, %v469_v38 }
  0xab   : > { %v583_v41 = vpop.f32.mrf.mxu2 }
  0xac   : > { %v587_v43 = vadd.f32 %v583_v41, %v528_v40  ;;  %v467_v44 = vpop.f32.mrf.mxu0  ;;  %v526_v45 = vpop.f32.mrf.mxu1 }
  0xae   : > { %v589_v46 = vadd.f32 %v588_v42, %v587_v43 }
  0xb0   : > { %591 = vst.msk [vmem:[%s391_s22] sm:$0xff] %vm590_vm3, %v589_v46  ;;  %v600_v47 = vpack.c.bf16 %v589_v46, %v589_v46  ;;  %v649_v49 = vmul.f32 %v589_v46, %v589_v46 }
  0xb2   : > { %945 = vmatmul.msk.bf16.vlgmr.msra.gmra.mxu3 %vm590_vm3, %v600_v47  ;;  %v650_v50 = vpack.c.bf16 %v649_v49, %v649_v49 }
  0xb3   : > { %v585_v48 = vpop.f32.mrf.mxu2 }
  0xc2   : > { %946 = vmatmul.msk.bf16.vlgmr.msrb.gmra.mxu3 %vm590_vm3, %v650_v50 }
 0x135   : > { %v637_v51 = vpop.f32.mrf.mxu3 }
 0x136   : > { %v642_v52 = vsel %vm641_vm4, %v637_v51, 0.0 }
 0x137   : > { %v643_v53 = vrot.slane %v642_v52, 4 }
 0x139   : > { %v644_v55 = vadd.f32 %v643_v53, %v642_v52 }
 0x13b   : > { %v645_v56 = vrot.slane %v644_v55, 2 }
 0x13d   : > { %v639_v54 = vpop.f32.mrf.mxu3  ;;  %v646_v60 = vadd.f32 %v645_v56, %v644_v55 }
 0x13f   : > { %v647_v63 = vrot.slane %v646_v60, 1 }
 0x141   : > { %v648_v3 = vadd.f32 %v647_v63, %v646_v60 }
 0x145   : > { %v663_v57 = vpop.f32.mrf.mxu3 }
 0x146   : > { %v667_v58 = vsel %vm641_vm4, %v663_v57, 0.0 }
 0x147   : > { %v668_v59 = vrot.slane %v667_v58, 4 }
 0x149   : > { %v669_v61 = vadd.f32 %v668_v59, %v667_v58 }
 0x14b   : > { %v670_v62 = vrot.slane %v669_v61, 2 }
 0x14d   : > { %v671_v0 = vadd.f32 %v670_v62, %v669_v61  ;;  %v665_v1 = vpop.f32.mrf.mxu3 }
 0x14f   : > { %v672_v2 = vrot.slane %v671_v0, 1 }
 0x151   : > { %v673_v4 = vadd.f32 %v672_v2, %v671_v0 }
 0x153   : > { %v675_v5 = vsel %vm674_vm5, %v648_v3, %v673_v4 }
 0x154   : > { %677 = vst.msk [vmem:[%s399_s9] sm:$0x3] %vm676_vm6, %v675_v5 }
 0x155 PF: > { %s18_s28 = sadd.s32 1, %s1045_s28   ;;  %s1234_s24 = smov %s1037_s26 }
 0x156   : > { %p15_p9 = scmp.ge.s32.totalorder %s18_s28, 6   ;;  %s1235_s25 = smov %s1041_s27 }
 0x157   : > { %s1236_s26 = smov %s1239_s29  ;;  %s1237_s27 = smov %s1243_s30 }
 0x158   :  { %17 = sbr.rel (!%p15_p9) target bundleno = 3 (0x3), region = 94 }

</bundles_post_ra>
